<compile_context>
chip_gen: v6e
topology: v6e:2x2x1
jax: 0.10.0
libtpu: 0.0.40
codegen_flags: <defaults>
</compile_context>

<pallas_src>
import math

import jax
import jax.numpy as jnp
from jax.experimental import pallas as pl
from jax.experimental.pallas import tpu as pltpu


HIDDEN = 32
_MAX_TM = 2048  # batch tile (rows); multiple of 128, VMEM-safe on v5e/v6e/v7x defaults


def _round_up(x, m):
    return (x + m - 1) // m * m


def _choose_tile(batch):
    """Batch tile: multiple of 128; prefer >=2 grid steps so v7x's 2 TCs both work."""
    b128 = _round_up(max(batch, 1), 128)
    if b128 <= 128:
        return 128
    half = _round_up((b128 + 1) // 2, 128)
    return min(_MAX_TM, half)


def critic_kernel(obs_ref, act_ref, w_obs_ref, w_act_ref, w_m1t_ref, w_m2t_ref,
                  head_ref, aux_ref, b_out_ref, out_ref):
    """One batch tile of the fused/folded Critic forward (batch-on-lanes).

    aux_ref columns: 0 = b_obs + b_act
                     1 = merge_fc1 bias with bn1 folded in
                     2 = merge_fc2 bias
    head_ref: (8, 32), row 0 = bn2_scale * output-weight row, rows 1..7 zero.
    b_out_ref: (1, 1) SMEM scalar = bn2_shift @ w_out + output bias.
    """
    # Stage 1, batch-major: fused observation_fc + action_fc (+ torch.add).
    h0 = jnp.dot(obs_ref[...], w_obs_ref[...], preferred_element_type=jnp.float32)
    h0 = h0 + jnp.dot(act_ref[...], w_act_ref[...], preferred_element_type=jnp.float32)

    # Single relayout to batch-on-lanes: (TM, 32) -> (32, TM); bias broadcasts on lanes.
    h = h0.T + aux_ref[:, 0:1]

    # merge_fc1 with bn1 folded in: (32, 32) @ (32, TM).
    h = jnp.dot(w_m1t_ref[...], h, preferred_element_type=jnp.float32) + aux_ref[:, 1:2]

    # tanh(merge_fc2); dropout is identity in eval mode.
    h = jnp.tanh(
        jnp.dot(w_m2t_ref[...], h, preferred_element_type=jnp.float32) + aux_ref[:, 2:3]
    )

    # output head with bn2 folded in: (8, 32) @ (32, TM) MXU pass, lane-dense result.
    res = jnp.dot(head_ref[...], h, preferred_element_type=jnp.float32)
    out_ref[...] = res[0:1, :] + b_out_ref[0, 0]


def critic_forward(observation, action, fused):
    """observation: [B, obs_dim] f32, action: [B, act_dim] f32 -> [B, 1] f32."""
    B = observation.shape[0]
    obs = observation.astype(jnp.float32)
    act = action.astype(jnp.float32)
    obs_dim = obs.shape[1]
    act_dim = act.shape[1]

    tm = _choose_tile(B)
    b_pad = _round_up(B, tm)
    if b_pad != B:
        # Pad only when the batch is ragged w.r.t. the tile (no-op for aligned batches).
        obs = jnp.pad(obs, ((0, b_pad - B), (0, 0)))
        act = jnp.pad(act, ((0, b_pad - B), (0, 0)))
    n_tiles = b_pad // tm

    out = pl.pallas_call(
        critic_kernel,
        out_shape=jax.ShapeDtypeStruct((1, b_pad), jnp.float32),
        grid_spec=pltpu.PrefetchScalarGridSpec(
            num_scalar_prefetch=0,
            grid=(n_tiles,),
            in_specs=[
                pl.BlockSpec((tm, obs_dim), lambda i: (i, 0)),       # batch-tiled obs
                pl.BlockSpec((tm, act_dim), lambda i: (i, 0)),       # batch-tiled act
                pl.BlockSpec((obs_dim, HIDDEN), lambda i: (0, 0)),   # weights stay resident
                pl.BlockSpec((act_dim, HIDDEN), lambda i: (0, 0)),
                pl.BlockSpec((HIDDEN, HIDDEN), lambda i: (0, 0)),
                pl.BlockSpec((HIDDEN, HIDDEN), lambda i: (0, 0)),
                pl.BlockSpec((8, HIDDEN), lambda i: (0, 0)),         # padded head row
                pl.BlockSpec((HIDDEN, 8), lambda i: (0, 0)),         # packed bias columns
                pl.BlockSpec(memory_space=pltpu.MemorySpace.SMEM),   # scalar output bias
            ],
            out_specs=pl.BlockSpec((1, tm), lambda i: (0, i)),       # lane-dense output
        ),
        compiler_params=pltpu.CompilerParams(
            dimension_semantics=("parallel",),
        ),
    )(obs, act, fused["w_obs"], fused["w_act"], fused["w_m1t"], fused["w_m2t"],
      fused["head"], fused["aux"], fused["b_out"])

    return out[0, :B][:, None]


def fold_params(params):
    """Host-side folding (exact, eval-mode):
       - bn1 folded into merge_fc1, bn2 folded into the output head,
       - merge weights pre-transposed for the batch-on-lanes pipeline,
       - bias columns packed into one (32, 8) aux array,
       - scalar output bias kept separate (goes to SMEM).
    """
    bn1_scale, bn1_shift = params["bn1_scale"], params["bn1_shift"]
    bn2_scale, bn2_shift = params["bn2_scale"], params["bn2_shift"]

    b_in = params["b_obs"] + params["b_act"]                          # (1, 32)

    w_m1t = (params["w_m1"] * bn1_scale).T                            # (32, 32)
    b_m1 = params["b_m1"] * bn1_scale + bn1_shift                     # (1, 32)

    w_m2t = params["w_m2"].T                                          # (32, 32)

    head = jnp.zeros((8, HIDDEN), jnp.float32)
    head = head.at[0].set(bn2_scale[0] * params["w_out"][:, 0])       # (8, 32), row 0 live
    b_out = (bn2_shift @ params["w_out"] + params["b_out"]).astype(jnp.float32)  # (1, 1)

    aux = jnp.zeros((HIDDEN, 8), jnp.float32)
    aux = aux.at[:, 0].set(b_in[0])
    aux = aux.at[:, 1].set(b_m1[0])
    aux = aux.at[:, 2].set(params["b_m2"][0])

    return {"w_obs": params["w_obs"], "w_act": params["w_act"],
            "w_m1t": w_m1t, "w_m2t": w_m2t,
            "head": head, "aux": aux, "b_out": b_out}


def _linear_init(key, fan_in, fan_out):
    """PyTorch nn.Linear default init: U(-1/sqrt(fan_in), 1/sqrt(fan_in))."""
    kw, kb = jax.random.split(key)
    bound = 1.0 / math.sqrt(fan_in)
    w = jax.random.uniform(kw, (fan_in, fan_out), jnp.float32, -bound, bound)
    b = jax.random.uniform(kb, (1, fan_out), jnp.float32, -bound, bound)
    return w, b


def _bn_stats(key):
    """Non-trivial eval-mode BatchNorm running stats, folded to scale/shift."""
    k1, k2, k3, k4 = jax.random.split(key, 4)
    gamma = jax.random.uniform(k1, (1, HIDDEN), jnp.float32, 0.5, 1.5)
    beta = 0.1 * jax.random.normal(k2, (1, HIDDEN), jnp.float32)
    running_mean = 0.1 * jax.random.normal(k3, (1, HIDDEN), jnp.float32)
    running_var = jax.random.uniform(k4, (1, HIDDEN), jnp.float32, 0.5, 1.5)
    scale = gamma / jnp.sqrt(running_var + 1e-5)
    shift = beta - running_mean * scale
    return scale, shift


def make_params(key, obs_dim, act_dim):
    keys = jax.random.split(key, 7)
    w_obs, b_obs = _linear_init(keys[0], obs_dim, HIDDEN)
    w_act, b_act = _linear_init(keys[1], act_dim, HIDDEN)
    w_m1, b_m1 = _linear_init(keys[2], HIDDEN, HIDDEN)
    w_m2, b_m2 = _linear_init(keys[3], HIDDEN, HIDDEN)
    w_out, b_out = _linear_init(keys[4], HIDDEN, 1)
    bn1_scale, bn1_shift = _bn_stats(keys[5])
    bn2_scale, bn2_shift = _bn_stats(keys[6])

    return {
        "w_obs": w_obs, "b_obs": b_obs,
        "w_act": w_act, "b_act": b_act,
        "w_m1": w_m1, "b_m1": b_m1,
        "bn1_scale": bn1_scale, "bn1_shift": bn1_shift,
        "w_m2": w_m2, "b_m2": b_m2,
        "bn2_scale": bn2_scale, "bn2_shift": bn2_shift,
        "w_out": w_out, "b_out": b_out,
    }


def critic_reference(observation, action, params):
    """Plain-JAX reference of the original (unfused) eval-mode forward."""
    hp = jax.lax.Precision.HIGHEST
    o = jnp.dot(observation, params["w_obs"], precision=hp) + params["b_obs"]
    a = jnp.dot(action, params["w_act"], precision=hp) + params["b_act"]
    h = o + a
    h = jnp.dot(h, params["w_m1"], precision=hp) + params["b_m1"]
    h = h * params["bn1_scale"] + params["bn1_shift"]
    h = jnp.tanh(jnp.dot(h, params["w_m2"], precision=hp) + params["b_m2"])
    h = h * params["bn2_scale"] + params["bn2_shift"]
    return jnp.dot(h, params["w_out"], precision=hp) + params["b_out"]


if __name__ == "__main__":
    key = jax.random.PRNGKey(0)
    k_obs, k_act, k_params = jax.random.split(key, 3)

    batch = 8
    observation_dim = 16
    action_dim = 4

    observation = jax.random.normal(k_obs, (batch, observation_dim), jnp.float32)
    action = jax.random.normal(k_act, (batch, action_dim), jnp.float32)
    params = make_params(k_params, observation_dim, action_dim)
    fused = fold_params(params)

    out = critic_forward(observation, action, fused)
    out = jax.block_until_ready(out)

    ref = critic_reference(observation, action, params)
    assert out.shape == (batch, 1)
    assert jnp.allclose(out, ref, atol=1e-4, rtol=1e-4), "Pallas output mismatch vs reference"

    print("KERNEL_OK")
</pallas_src>

<mosaic_0001>
module attributes {stable_mosaic.version = 11 : i64} {
  func.func @critic_kernel(%arg0: i32, %arg1: memref<128x16xf32, #tpu.memory_space<vmem>>, %arg2: memref<128x4xf32, #tpu.memory_space<vmem>>, %arg3: memref<16x32xf32, #tpu.memory_space<vmem>>, %arg4: memref<4x32xf32, #tpu.memory_space<vmem>>, %arg5: memref<32x32xf32, #tpu.memory_space<vmem>>, %arg6: memref<32x32xf32, #tpu.memory_space<vmem>>, %arg7: memref<8x32xf32, #tpu.memory_space<vmem>>, %arg8: memref<32x8xf32, #tpu.memory_space<vmem>>, %arg9: memref<1x1xf32, #tpu.memory_space<smem>>, %arg10: memref<1x128xf32, #tpu.memory_space<vmem>>) attributes {dimension_semantics = [#tpu.dimension_semantics<parallel>], iteration_bounds = array<i64: 1>, scalar_prefetch = 0 : i64, scratch_operands = 0 : i64, tpu.core_type = #tpu.core_type<tc>, window_params = [{transform_indices = @transform_0, window_bounds = array<i64: 128, 16>}, {transform_indices = @transform_1, window_bounds = array<i64: 128, 4>}, {pipeline_mode = #tpu.pipeline_mode<synchronous>, transform_indices = @transform_2, window_bounds = array<i64: 16, 32>}, {pipeline_mode = #tpu.pipeline_mode<synchronous>, transform_indices = @transform_3, window_bounds = array<i64: 4, 32>}, {pipeline_mode = #tpu.pipeline_mode<synchronous>, transform_indices = @transform_4, window_bounds = array<i64: 32, 32>}, {pipeline_mode = #tpu.pipeline_mode<synchronous>, transform_indices = @transform_5, window_bounds = array<i64: 32, 32>}, {pipeline_mode = #tpu.pipeline_mode<synchronous>, transform_indices = @transform_6, window_bounds = array<i64: 8, 32>}, {pipeline_mode = #tpu.pipeline_mode<synchronous>, transform_indices = @transform_7, window_bounds = array<i64: 32, 8>}, {transform_indices = @transform_8, window_bounds = array<i64: 1, 1>}, {transform_indices = @transform_9, window_bounds = array<i64: 1, 128>}]} {
    %c0 = arith.constant 0 : index
    %c0_0 = arith.constant 0 : index
    %0 = vector.load %arg1[%c0, %c0_0] : memref<128x16xf32, #tpu.memory_space<vmem>>, vector<128x16xf32>
    %c0_1 = arith.constant 0 : index
    %c0_2 = arith.constant 0 : index
    %1 = vector.load %arg3[%c0_1, %c0_2] : memref<16x32xf32, #tpu.memory_space<vmem>>, vector<16x32xf32>
    %cst = arith.constant dense<0.000000e+00> : vector<128x32xf32>
    %2 = tpu.matmul %0, %1, %cst {dimension_numbers = #tpu.dot_dimension_numbers<[1], [0], [0], [1], [0, 0, 1, 1], [], []>} : vector<128x16xf32>, vector<16x32xf32>, vector<128x32xf32> -> vector<128x32xf32>
    %c0_3 = arith.constant 0 : index
    %c0_4 = arith.constant 0 : index
    %3 = vector.load %arg2[%c0_3, %c0_4] : memref<128x4xf32, #tpu.memory_space<vmem>>, vector<128x4xf32>
    %c0_5 = arith.constant 0 : index
    %c0_6 = arith.constant 0 : index
    %4 = vector.load %arg4[%c0_5, %c0_6] : memref<4x32xf32, #tpu.memory_space<vmem>>, vector<4x32xf32>
    %cst_7 = arith.constant dense<0.000000e+00> : vector<128x32xf32>
    %5 = tpu.matmul %3, %4, %cst_7 {dimension_numbers = #tpu.dot_dimension_numbers<[1], [0], [0], [1], [0, 0, 1, 1], [], []>} : vector<128x4xf32>, vector<4x32xf32>, vector<128x32xf32> -> vector<128x32xf32>
    %6 = arith.addf %2, %5 : vector<128x32xf32>
    %7 = tpu.transpose %6, [1, 0] : vector<128x32xf32> -> vector<32x128xf32>
    %c0_8 = arith.constant 0 : index
    %c0_9 = arith.constant 0 : index
    %8 = vector.load %arg8[%c0_8, %c0_9] : memref<32x8xf32, #tpu.memory_space<vmem>>, vector<32x1xf32>
    %9 = vector.broadcast %8 : vector<32x1xf32> to vector<32x128xf32>
    %10 = arith.addf %7, %9 : vector<32x128xf32>
    %c0_10 = arith.constant 0 : index
    %c0_11 = arith.constant 0 : index
    %11 = vector.load %arg5[%c0_10, %c0_11] : memref<32x32xf32, #tpu.memory_space<vmem>>, vector<32x32xf32>
    %cst_12 = arith.constant dense<0.000000e+00> : vector<32x128xf32>
    %12 = tpu.matmul %11, %10, %cst_12 {dimension_numbers = #tpu.dot_dimension_numbers<[1], [0], [0], [1], [0, 0, 1, 1], [], []>} : vector<32x32xf32>, vector<32x128xf32>, vector<32x128xf32> -> vector<32x128xf32>
    %c0_13 = arith.constant 0 : index
    %c1 = arith.constant 1 : index
    %13 = vector.load %arg8[%c0_13, %c1] : memref<32x8xf32, #tpu.memory_space<vmem>>, vector<32x1xf32>
    %14 = vector.broadcast %13 : vector<32x1xf32> to vector<32x128xf32>
    %15 = arith.addf %12, %14 : vector<32x128xf32>
    %c0_14 = arith.constant 0 : index
    %c0_15 = arith.constant 0 : index
    %16 = vector.load %arg6[%c0_14, %c0_15] : memref<32x32xf32, #tpu.memory_space<vmem>>, vector<32x32xf32>
    %cst_16 = arith.constant dense<0.000000e+00> : vector<32x128xf32>
    %17 = tpu.matmul %16, %15, %cst_16 {dimension_numbers = #tpu.dot_dimension_numbers<[1], [0], [0], [1], [0, 0, 1, 1], [], []>} : vector<32x32xf32>, vector<32x128xf32>, vector<32x128xf32> -> vector<32x128xf32>
    %c0_17 = arith.constant 0 : index
    %c2 = arith.constant 2 : index
    %18 = vector.load %arg8[%c0_17, %c2] : memref<32x8xf32, #tpu.memory_space<vmem>>, vector<32x1xf32>
    %19 = vector.broadcast %18 : vector<32x1xf32> to vector<32x128xf32>
    %20 = arith.addf %17, %19 : vector<32x128xf32>
    %21 = math.tanh %20 : vector<32x128xf32>
    %c0_18 = arith.constant 0 : index
    %c0_19 = arith.constant 0 : index
    %22 = vector.load %arg7[%c0_18, %c0_19] : memref<8x32xf32, #tpu.memory_space<vmem>>, vector<8x32xf32>
    %cst_20 = arith.constant dense<0.000000e+00> : vector<8x128xf32>
    %23 = tpu.matmul %22, %21, %cst_20 {dimension_numbers = #tpu.dot_dimension_numbers<[1], [0], [0], [1], [0, 0, 1, 1], [], []>} : vector<8x32xf32>, vector<32x128xf32>, vector<8x128xf32> -> vector<8x128xf32>
    %24 = vector.extract_strided_slice %23 {offsets = [0, 0], sizes = [1, 128], strides = [1, 1]} : vector<8x128xf32> to vector<1x128xf32>
    %c0_21 = arith.constant 0 : index
    %c0_22 = arith.constant 0 : index
    %25 = memref.load %arg9[%c0_21, %c0_22] : memref<1x1xf32, #tpu.memory_space<smem>>
    %26 = vector.broadcast %25 : f32 to vector<1x128xf32>
    %27 = arith.addf %24, %26 : vector<1x128xf32>
    %c0_23 = arith.constant 0 : index
    %c0_24 = arith.constant 0 : index
    %28 = vector.load %arg10[%c0_23, %c0_24] : memref<1x128xf32, #tpu.memory_space<vmem>>, vector<1x128xf32>
    tpu.vector_store %arg10[%c0_23, %c0_24], %27 {strides = array<i32>} : memref<1x128xf32, #tpu.memory_space<vmem>>, vector<1x128xf32>,
    return
  }
  func.func @transform_0(%arg0: i32) -> (i32, i32) {
    %c0_i32 = arith.constant 0 : i32
    %c0_i32_0 = arith.constant 0 : i32
    return %arg0, %c0_i32 : i32, i32
  }
  func.func @transform_1(%arg0: i32) -> (i32, i32) {
    %c0_i32 = arith.constant 0 : i32
    %c0_i32_0 = arith.constant 0 : i32
    return %arg0, %c0_i32 : i32, i32
  }
  func.func @transform_2(%arg0: i32) -> (i32, i32) {
    %c0_i32 = arith.constant 0 : i32
    %c0_i32_0 = arith.constant 0 : i32
    %c0_i32_1 = arith.constant 0 : i32
    return %c0_i32, %c0_i32_0 : i32, i32
  }
  func.func @transform_3(%arg0: i32) -> (i32, i32) {
    %c0_i32 = arith.constant 0 : i32
    %c0_i32_0 = arith.constant 0 : i32
    %c0_i32_1 = arith.constant 0 : i32
    return %c0_i32, %c0_i32_0 : i32, i32
  }
  func.func @transform_4(%arg0: i32) -> (i32, i32) {
    %c0_i32 = arith.constant 0 : i32
    %c0_i32_0 = arith.constant 0 : i32
    %c0_i32_1 = arith.constant 0 : i32
    return %c0_i32, %c0_i32_0 : i32, i32
  }
  func.func @transform_5(%arg0: i32) -> (i32, i32) {
    %c0_i32 = arith.constant 0 : i32
    %c0_i32_0 = arith.constant 0 : i32
    %c0_i32_1 = arith.constant 0 : i32
    return %c0_i32, %c0_i32_0 : i32, i32
  }
  func.func @transform_6(%arg0: i32) -> (i32, i32) {
    %c0_i32 = arith.constant 0 : i32
    %c0_i32_0 = arith.constant 0 : i32
    %c0_i32_1 = arith.constant 0 : i32
    return %c0_i32, %c0_i32_0 : i32, i32
  }
  func.func @transform_7(%arg0: i32) -> (i32, i32) {
    %c0_i32 = arith.constant 0 : i32
    %c0_i32_0 = arith.constant 0 : i32
    %c0_i32_1 = arith.constant 0 : i32
    return %c0_i32, %c0_i32_0 : i32, i32
  }
  func.func @transform_8(%arg0: i32) -> (i32, i32) {
    %c0_i32 = arith.constant 0 : i32
    %c0_i32_0 = arith.constant 0 : i32
    %c0_i32_1 = arith.constant 0 : i32
    return %c0_i32, %c0_i32_0 : i32, i32
  }
  func.func @transform_9(%arg0: i32) -> (i32, i32) {
    %c0_i32 = arith.constant 0 : i32
    %c0_i32_0 = arith.constant 0 : i32
    return %c0_i32, %arg0 : i32, i32
  }
}

</mosaic_0001>

<bundles_post_ra>
// kernel: tpu_custom_call.1
= control target key start
LH: loop header
LB: loop body
LE: loop exit
PB: predicated region body
PF: predicated region fallthrough
CT: control target
= control target key end

     0   :  { %vm118_vm0 = vcmask 1043456   ;;  %vm69_vm1 = vcmask 31744   ;;  %vm267_vm2 = vcmask 130048   ;;  %v1084_v11 = vmov 0   ;;  %s1351_s0 = inlined_call_operand.vmem [shape: f32[128,16], index: 0, kind: input, shape index: {}]   ;;  %s1352_s1 = inlined_call_operand.vmem [shape: f32[128,4], index: 1, kind: input, shape index: {}]   ;;  %s1353_s2 = inlined_call_operand.vmem [shape: f32[16,32], index: 2, kind: input, shape index: {}]   ;;  %s1354_s3 = inlined_call_operand.vmem [shape: f32[4,32], index: 3, kind: input, shape index: {}]   ;;  %s1355_s4 = inlined_call_operand.vmem [shape: f32[32,32], index: 4, kind: input, shape index: {}]   ;;  %s1356_s5 = inlined_call_operand.vmem [shape: f32[32,32], index: 5, kind: input, shape index: {}]   ;;  %s1357_s6 = inlined_call_operand.vmem [shape: f32[8,32], index: 6, kind: input, shape index: {}]   ;;  %s1358_s7 = inlined_call_operand.vmem [shape: f32[32,8], index: 7, kind: input, shape index: {}]   ;;  %s1359_s8 = inlined_call_operand.<no memory space> [shape: f32[1,1], index: 8, kind: input, shape index: {}]   ;;  %s1360_s9 = inlined_call_operand.hbm [shape: f32[1,128], index: 9, kind: output, shape index: {}]  }
   0x1   :  { %v68_v0 = vld [vmem:[%s1354_s3] sm:$0xf]  ;;  %v51_v1 = vld [vmem:[%s1353_s2 + $0x8] sm:$0xff]  ;;  %v54_v6 = vld [vmem:[%s1352_s1 + $0x10] sm:$0xff]  ;;  %1049 = vset.pattern.permute.xlu0 %v1084_v11  ;;  %1050 = vset.pattern.permute.xlu1 %v1084_v11 }
   0x2   :  { %v52_v2 = vld [vmem:[%s1352_s1] sm:$0xff]  ;;  %950 = vmatprep.subr.msk.mxu0 %vm118_vm0, %v68_v0  ;;  %976 = vmatprep.subr.mxu1 %v51_v1  ;;  %v53_v3 = vld [vmem:[%s1352_s1 + $0x8] sm:$0xff]  ;;  %v36_v8 = vld [vmem:[%s1351_s0 + $0x10] sm:$0xff] }
   0x3   :  { %v50_v4 = vld [vmem:[%s1353_s2] sm:$0xff]  ;;  %951 = vmatpush3.msk.msra.mxu0 %vm118_vm0, %v68_v0  ;;  %952 = vmatprep.mubr.msk.f32.mxu0 %vm69_vm1, %v52_v2  ;;  %v35_v7 = vld [vmem:[%s1351_s0 + $0x8] sm:$0xff]  ;;  %v55_v9 = vld [vmem:[%s1352_s1 + $0x18] sm:$0xff] }
   0x4   :  { %v34_v5 = vld [vmem:[%s1351_s0] sm:$0xff]  ;;  %977 = vmatpush3.msra.mxu1 %v51_v1  ;;  %953 = vmatmul.mubr.msk.f32.vlgmr.msra.gmra.mxu0 %vm69_vm1, %v53_v3  ;;  %v37_v12 = vld [vmem:[%s1351_s0 + $0x18] sm:$0xff]  ;;  %v57_v14 = vld [vmem:[%s1352_s1 + $0x28] sm:$0xff] }
   0x5   :  { %978 = vmatprep.subr.mxu1 %v50_v4  ;;  %980 = vmatprep.mubr.msk.f32.mxu1 %vm267_vm2, %v34_v5  ;;  %v56_v10 = vld [vmem:[%s1352_s1 + $0x20] sm:$0xff]  ;;  %v58_v15 = vld [vmem:[%s1352_s1 + $0x30] sm:$0xff]  ;;  %v39_v16 = vld [vmem:[%s1351_s0 + $0x28] sm:$0xff] }
   0x6   :  { %979 = vmatpush3.msra.mxu1 %v50_v4  ;;  %955 = vmatprep.mubr.msk.f32.mxu0 %vm69_vm1, %v54_v6  ;;  %v38_v13 = vld [vmem:[%s1351_s0 + $0x20] sm:$0xff]  ;;  %v1202_v17 = vld [vmem:[%s1358_s7 + $0x18] sm:$0xff]  ;;  %v40_v18 = vld [vmem:[%s1351_s0 + $0x30] sm:$0xff] }
   0x7   :  { %981 = vmatmul.mubr.msk.f32.vlgmr.msra.gmra.mxu1 %vm267_vm2, %v35_v7  ;;  %v59_v19 = vld [vmem:[%s1352_s1 + $0x38] sm:$0xff]  ;;  %514 = vperm.xlu0 %1049, %v1202_v17  }
   0x8   :  { %983 = vmatprep.mubr.msk.f32.mxu1 %vm267_vm2, %v36_v8  ;;  %956 = vmatmul.mubr.msk.f32.gmra.mxu0 %vm69_vm1, %v55_v9 }
   0x9   :  { %958 = vmatprep.mubr.msk.f32.mxu0 %vm69_vm1, %v56_v10 }
   0xb   :  { %984 = vmatmul.mubr.msk.f32.gmra.mxu1 %vm267_vm2, %v37_v12 }
   0xc   :  { %986 = vmatprep.mubr.msk.f32.mxu1 %vm267_vm2, %v38_v13  ;;  %959 = vmatmul.mubr.msk.f32.gmra.mxu0 %vm69_vm1, %v57_v14 }
   0xd   :  { %961 = vmatprep.mubr.msk.f32.mxu0 %vm69_vm1, %v58_v15 }
   0xe   :  { %15 = vsyncpa [#allocation4], 0  ;;  %v60_v20 = vld [vmem:[%s1352_s1 + $0x40] sm:$0xff]  ;;  %v1218_v21 = vld [vmem:[%s1358_s7 + $0x10] sm:$0xff]  ;;  %vm541_vm3 = vcmask 261120   ;;  %v1085_v2 = vmov 1  }
   0xf   :  { %987 = vmatmul.mubr.msk.f32.gmra.mxu1 %vm267_vm2, %v39_v16  ;;  %v41_v22 = vld [vmem:[%s1351_s0 + $0x38] sm:$0xff]  ;;  %v42_v23 = vld [vmem:[%s1351_s0 + $0x40] sm:$0xff]  ;;  %v61_v24 = vld [vmem:[%s1352_s1 + $0x48] sm:$0xff]  ;;  %509 = vperm.xlu0 %1049, %v1218_v21   ;;  %vm1088_vm4 = vmmov 0   ;;  %s1089_s10 = smov [#allocation3]  }
  0x10   :  { %989 = vmatprep.mubr.msk.f32.mxu1 %vm267_vm2, %v40_v18  ;;  %962 = vmatmul.mubr.msk.f32.gmra.mxu0 %vm69_vm1, %v59_v19  ;;  %v62_v25 = vld [vmem:[%s1352_s1 + $0x50] sm:$0xff]  ;;  %v43_v26 = vld [vmem:[%s1351_s0 + $0x48] sm:$0xff]  ;;  %v63_v28 = vld [vmem:[%s1352_s1 + $0x58] sm:$0xff]  ;;  %s844_s11 = sshll.u32 %s1089_s10, 4  ;;  %s845_s11 = int_to_ptr.vmem [resolvable:$true] %s844_s11 }
  0x11   :  { %964 = vmatprep.mubr.msk.f32.mxu0 %vm69_vm1, %v60_v20  ;;  %v44_v27 = vld [vmem:[%s1351_s0 + $0x50] sm:$0xff]  ;;  %v64_v29 = vld [vmem:[%s1352_s1 + $0x60] sm:$0xff]  ;;  %v45_v30 = vld [vmem:[%s1351_s0 + $0x58] sm:$0xff]  ;;  %s1062_s12 = scalar_lea.vmem %s845_s11, 16  ;;  %s1066_s13 = scalar_lea.vmem %s845_s11, 32 }
  0x12   :  { %v46_v31 = vld [vmem:[%s1351_s0 + $0x60] sm:$0xff]  ;;  %v65_v32 = vld [vmem:[%s1352_s1 + $0x68] sm:$0xff]  ;;  %v66_v33 = vld [vmem:[%s1352_s1 + $0x70] sm:$0xff]  ;;  %p1063_p0 = scmp.ne.s32.totalorder %s845_s11, %s1062_s12  ;;  %p1067_p1 = scmp.lt.s32.totalorder %s845_s11, %s845_s11 }
  0x13   :  { %990 = vmatmul.mubr.msk.f32.gmra.mxu1 %vm267_vm2, %v41_v22  ;;  %v47_v34 = vld [vmem:[%s1351_s0 + $0x68] sm:$0xff]  ;;  %v48_v35 = vld [vmem:[%s1351_s0 + $0x70] sm:$0xff]  ;;  %v67_v36 = vld [vmem:[%s1352_s1 + $0x78] sm:$0xff]  ;;  %p1068_p2 = scmp.lt.s32.totalorder %s1066_s13, %s1062_s12 }
  0x14   :  { %992 = vmatprep.mubr.msk.f32.mxu1 %vm267_vm2, %v42_v23  ;;  %965 = vmatmul.mubr.msk.f32.gmra.mxu0 %vm69_vm1, %v61_v24  ;;  %v49_v37 = vld [vmem:[%s1351_s0 + $0x78] sm:$0xff]  ;;  %v1292_v38 = vld [vmem:[%s1358_s7 + $0x8] sm:$0xff]  ;;  %v1298_v39 = vld [vmem:[%s1358_s7] sm:$0xff] }
  0x15   :  { %967 = vmatprep.mubr.msk.f32.mxu0 %vm69_vm1, %v62_v25  ;;  %504 = vperm.xlu1 %1050, %v1292_v38   ;;  %v521_v59 = vld [vmem:[%s1355_s4] sm:$0xff]  ;;  %p1069_p3 = por %p1068_p2, %p1067_p1 }
  0x17   :  { %993 = vmatmul.mubr.msk.f32.gmra.mxu1 %vm267_vm2, %v43_v26  ;;  %p1070_p4 = pnand %p1069_p3, %p1063_p0 }
  0x18   :  { %995 = vmatprep.mubr.msk.f32.mxu1 %vm267_vm2, %v44_v27  ;;  %968 = vmatmul.mubr.msk.f32.gmra.mxu0 %vm69_vm1, %v63_v28 }
  0x19   :  { %970 = vmatprep.mubr.msk.f32.mxu0 %vm69_vm1, %v64_v29  ;;  %499 = vperm.xlu1 %1050, %v1298_v39  }
  0x1b   :  { %996 = vmatmul.mubr.msk.f32.gmra.mxu1 %vm267_vm2, %v45_v30 }
  0x1c   :  { %998 = vmatprep.mubr.msk.f32.mxu1 %vm267_vm2, %v46_v31  ;;  %971 = vmatmul.mubr.msk.f32.gmra.mxu0 %vm69_vm1, %v65_v32 }
  0x1d   :  { %973 = vmatprep.mubr.msk.f32.mxu0 %vm69_vm1, %v66_v33  ;;  %1051 = vset.pattern.permute.xlu1 %v1085_v2 }
  0x1e   :  { %538 = vperm.xlu1 %1051, %v1202_v17  }
  0x1f   :  { %999 = vmatmul.mubr.msk.f32.gmra.mxu1 %vm267_vm2, %v47_v34 }
  0x20   :  { %1001 = vmatprep.mubr.msk.f32.mxu1 %vm267_vm2, %v48_v35  ;;  %974 = vmatmul.mubr.msk.f32.gmra.mxu0 %vm69_vm1, %v67_v36 }
  0x21   :  { %1012 = vmatprep.mubr.msk.f32.mxu0 %vm541_vm3, %v521_v59 }
  0x22   :  { %534 = vperm.xlu1 %1051, %v1218_v21  }
  0x23   :  { %1002 = vmatmul.mubr.msk.f32.gmra.mxu1 %vm267_vm2, %v49_v37 }
  0x26   :  { %530 = vperm.xlu1 %1051, %v1292_v38  }
  0x2a   :  { %526 = vperm.xlu1 %1051, %v1298_v39  }
  0x82   :  { %v515_v28 = vpop.permute.xlu0 %514 }
  0x8a   :  { %v510_v29 = vpop.permute.xlu0 %509 }
  0x90   :  { %v505_v33 = vpop.permute.xlu1 %504 }
  0x94   :  { %v500_v37 = vpop.permute.xlu1 %499 }
  0xc4   :  { %v954_v40 = vpop.f32.mrf.mxu0 }
  0xc6   :  { %v188_v42 = vpop.f32.mrf.mxu0 }
  0xc7   :  { %v982_v41 = vpop.f32.mrf.mxu1 }
  0xc8   :  { %v957_v45 = vpop.f32.mrf.mxu0  ;;  %v388_v47 = vadd.f32 %v982_v41, %v954_v40 }
  0xc9   :  { %v382_v43 = vpop.f32.mrf.mxu1 }
  0xca   :  { %v383_v44 = vadd.f32 %v382_v43, %v188_v42  ;;  %v198_v48 = vpop.f32.mrf.mxu0  ;;  %v522_v42 = vld [vmem:[%s1355_s4 + $0x8] sm:$0xff]  ;;  %v523_v43 = vld [vmem:[%s1355_s4 + $0x10] sm:$0xff] }
  0xcb   :  { %v985_v46 = vpop.f32.mrf.mxu1 }
  0xcc   :  { %461 = vxpose.xlu0.b32.start [1/16] (narrow) %v383_v44, 32  ;;  %v960_v51 = vpop.f32.mrf.mxu0  ;;  %v398_v53 = vadd.f32 %v985_v46, %v957_v45  ;;  %v524_v44 = vld [vmem:[%s1355_s4 + $0x18] sm:$0xff]  ;;  %v639_v45 = vld [vmem:[%s1356_s5] sm:$0xff]  ;;  %v1086_v46 = vmov 2  }
  0xcd   :  { %v392_v49 = vpop.f32.mrf.mxu1  ;;  %1026 = vmatprep.mubr.msk.f32.mxu1 %vm541_vm3, %v639_v45  ;;  %1052 = vset.pattern.permute.xlu1 %v1086_v46 }
  0xce   :  { %v393_v50 = vadd.f32 %v392_v49, %v198_v48  ;;  %v208_v54 = vpop.f32.mrf.mxu0  ;;  %656 = vperm.xlu1 %1052, %v1202_v17  }
  0xcf   :  { %v988_v52 = vpop.f32.mrf.mxu1 }
  0xd0   :  { %462 = vxpose.xlu0.b32.cont [2/16] (narrow) %v388_v47, 32  ;;  %v963_v57 = vpop.f32.mrf.mxu0  ;;  %v408_v60 = vadd.f32 %v988_v52, %v960_v51  ;;  %v539_v47 = vpop.permute.xlu1 %538 }
  0xd1   :  { %v402_v55 = vpop.f32.mrf.mxu1 }
  0xd2   :  { %v403_v56 = vadd.f32 %v402_v55, %v208_v54  ;;  %v218_v61 = vpop.f32.mrf.mxu0  ;;  %652 = vperm.xlu1 %1052, %v1218_v21  }
  0xd3   :  { %v991_v58 = vpop.f32.mrf.mxu1 }
  0xd4   :  { %463 = vxpose.xlu0.b32.cont [3/16] (narrow) %v393_v50, 32  ;;  %v966_v0 = vpop.f32.mrf.mxu0  ;;  %v418_v3 = vadd.f32 %v991_v58, %v963_v57  ;;  %v535_v48 = vpop.permute.xlu1 %534  ;;  %v642_v57 = vld [vmem:[%s1356_s5 + $0x18] sm:$0xff]  ;;  %v1087_v58 = vmov 0.0  }
  0xd5   :  { %v412_v62 = vpop.f32.mrf.mxu1 }
  0xd6   :  { %v413_v63 = vadd.f32 %v412_v62, %v218_v61  ;;  %v228_v4 = vpop.f32.mrf.mxu0  ;;  %648 = vperm.xlu1 %1052, %v1292_v38   ;;  %v640_v38 = vld [vmem:[%s1356_s5 + $0x8] sm:$0xff] }
  0xd7   :  { %v994_v1 = vpop.f32.mrf.mxu1 }
  0xd8   :  { %464 = vxpose.xlu0.b32.cont [4/16] (narrow) %v398_v53, 32  ;;  %v969_v7 = vpop.f32.mrf.mxu0  ;;  %v428_v9 = vadd.f32 %v994_v1, %v966_v0  ;;  %v531_v51 = vpop.permute.xlu1 %530 }
  0xd9   :  { %v422_v5 = vpop.f32.mrf.mxu1 }
  0xda   :  { %v423_v6 = vadd.f32 %v422_v5, %v228_v4  ;;  %v238_v10 = vpop.f32.mrf.mxu0  ;;  %644 = vperm.xlu1 %1052, %v1298_v39   ;;  %v641_v39 = vld [vmem:[%s1356_s5 + $0x10] sm:$0xff] }
  0xdb   :  { %v997_v8 = vpop.f32.mrf.mxu1 }
  0xdc   :  { %465 = vxpose.xlu0.b32.cont [5/16] (narrow) %v403_v56, 32  ;;  %v972_v13 = vpop.f32.mrf.mxu0  ;;  %v438_v15 = vadd.f32 %v997_v8, %v969_v7  ;;  %v527_v17 = vpop.permute.xlu1 %526 }
  0xdd   :  { %v432_v11 = vpop.f32.mrf.mxu1 }
  0xde   :  { %v433_v12 = vadd.f32 %v432_v11, %v238_v10  ;;  %v248_v16 = vpop.f32.mrf.mxu0  ;;  %v760_v10 = vld [vmem:[%s1357_s6] sm:$0xff] }
  0xdf   :  { %v1000_v14 = vpop.f32.mrf.mxu1 }
  0xe0   :  { %466 = vxpose.xlu0.b32.cont [6/16] (narrow) %v408_v60, 32  ;;  %v975_v20 = vpop.f32.mrf.mxu0  ;;  %v448_v23 = vadd.f32 %v1000_v14, %v972_v13 }
  0xe1   :  { %v442_v18 = vpop.f32.mrf.mxu1 }
  0xe2   :  { %v443_v19 = vadd.f32 %v442_v18, %v248_v16  ;;  %v258_v24 = vpop.f32.mrf.mxu0 }
  0xe3   :  { %v1003_v22 = vpop.f32.mrf.mxu1 }
  0xe4   :  { %467 = vxpose.xlu0.b32.cont [7/16] (narrow) %v413_v63, 32  ;;  %v458_v27 = vadd.f32 %v1003_v22, %v975_v20 }
  0xe5   :  { %v452_v25 = vpop.f32.mrf.mxu1 }
  0xe6   :  { %v453_v26 = vadd.f32 %v452_v25, %v258_v24 }
  0xe8   :  { %468 = vxpose.xlu0.b32.cont [8/16] (narrow) %v418_v3, 32 }
  0xec   :  { %469 = vxpose.xlu0.b32.cont [9/16] (narrow) %v423_v6, 32 }
  0xf0   :  { %470 = vxpose.xlu0.b32.cont [10/16] (narrow) %v428_v9, 32 }
  0xf4   :  { %471 = vxpose.xlu0.b32.cont [11/16] (narrow) %v433_v12, 32  ;;  %v835_v12 = vstv %s1359_s8 }
  0xf8   :  { %472 = vxpose.xlu0.b32.cont [12/16] (narrow) %v438_v15, 32 }
  0xfc   :  { %473 = vxpose.xlu0.b32.cont [13/16] (narrow) %v443_v19, 32 }
 0x100   :  { %474 = vxpose.xlu0.b32.cont [14/16] (narrow) %v448_v23, 32 }
 0x104   :  { %475 = vxpose.xlu0.b32.cont [15/16] (narrow) %v453_v26, 32 }
 0x108   :  { %476 = vxpose.xlu0.b32.end [16/16] (narrow) %v458_v27, 32 }
 0x131   :  { %1053 = vset.pattern.permute.xlu0 %v1086_v46 }
 0x148   :  { %v477_v30 = vpop.trf.xlu0 }
 0x149   :  { %v517_v41 = vadd.f32 %v500_v37, %v477_v30  ;;  %v657_v59 = vpop.permute.xlu1 %656 }
 0x14c   :  { %v478_v31 = vpop.trf.xlu0 }
 0x14d   :  { %v518_v40 = vadd.f32 %v505_v33, %v478_v31  ;;  %v653_v60 = vpop.permute.xlu1 %652 }
 0x150   :  { %v479_v32 = vpop.trf.xlu0 }
 0x151   :  { %v519_v36 = vadd.f32 %v510_v29, %v479_v32  ;;  %v649_v63 = vpop.permute.xlu1 %648 }
 0x154   :  { %v480_v34 = vpop.trf.xlu0 }
 0x155   :  { %v520_v35 = vadd.f32 %v515_v28, %v480_v34  ;;  %v645_v5 = vpop.permute.xlu1 %644 }
 0x157   :  { %1004 = vmatprep.subr.mxu0 %v520_v35 }
 0x158   :  { %1005 = vmatpush3.msra.mxu0 %v520_v35 }
 0x159   :  { %1006 = vmatprep.subr.mxu0 %v519_v36 }
 0x15a   :  { %1007 = vmatpush3.msra.mxu0 %v519_v36 }
 0x15b   :  { %1008 = vmatprep.subr.mxu0 %v518_v40 }
 0x15c   :  { %1009 = vmatpush3.msra.mxu0 %v518_v40 }
 0x15d   :  { %1010 = vmatprep.subr.mxu0 %v517_v41 }
 0x15e   :  { %1011 = vmatpush3.msra.mxu0 %v517_v41 }
 0x15f   :  { %1013 = vmatmul.mubr.msk.f32.vlgmr.msra.gmra.mxu0 %vm541_vm3, %v522_v42  ;;  %1032 = vmatprep.subr.mxu0 %v1087_v58 }
 0x160   :  { %1015 = vmatprep.mubr.msk.f32.mxu0 %vm541_vm3, %v523_v43 }
 0x163   :  { %1016 = vmatmul.mubr.msk.f32.gmra.mxu0 %vm541_vm3, %v524_v44 }
 0x164   :  { %1040 = vmatprep.mubr.msk.f32.mxu0 %vm1088_vm4, %v1087_v58 }
 0x21f   :  { %v1014_v49 = vpop.f32.mrf.mxu0 }
 0x220   :  { %v626_v56 = vadd.f32 %v1014_v49, %v531_v51 }
 0x221   :  { %v620_v50 = vpop.f32.mrf.mxu0 }
 0x222   :  { %v621_v21 = vadd.f32 %v620_v50, %v527_v17 }
 0x223   :  { %v1017_v52 = vpop.f32.mrf.mxu0 }
 0x224   :  { %v636_v53 = vadd.f32 %v1017_v52, %v539_v47 }
 0x225   :  { %v630_v54 = vpop.f32.mrf.mxu0 }
 0x226   :  { %v631_v55 = vadd.f32 %v630_v54, %v535_v48  ;;  %1018 = vmatprep.subr.mxu1 %v636_v53 }
 0x227   :  { %1019 = vmatpush3.msra.mxu1 %v636_v53 }
 0x228   :  { %1020 = vmatprep.subr.mxu1 %v631_v55 }
 0x229   :  { %1021 = vmatpush3.msra.mxu1 %v631_v55 }
 0x22a   :  { %1022 = vmatprep.subr.mxu1 %v626_v56 }
 0x22b   :  { %1023 = vmatpush3.msra.mxu1 %v626_v56 }
 0x22c   :  { %1024 = vmatprep.subr.mxu1 %v621_v21 }
 0x22d   :  { %1025 = vmatpush3.msra.mxu1 %v621_v21 }
 0x22e   :  { %1027 = vmatmul.mubr.msk.f32.vlgmr.msra.gmra.mxu1 %vm541_vm3, %v640_v38 }
 0x22f   :  { %1029 = vmatprep.mubr.msk.f32.mxu1 %vm541_vm3, %v641_v39 }
 0x232   :  { %1030 = vmatmul.mubr.msk.f32.gmra.mxu1 %vm541_vm3, %v642_v57 }
 0x2ee   :  { %v1028_v61 = vpop.f32.mrf.mxu1 }
 0x2ef   :  { %v743_v3 = vadd.f32 %v1028_v61, %v649_v63 }
 0x2f0   :  { %v737_v62 = vpop.f32.mrf.mxu1 }
 0x2f1   :  { %v738_v6 = vadd.f32 %v737_v62, %v645_v5 }
 0x2f2   :  { %v1031_v0 = vpop.f32.mrf.mxu1 }
 0x2f3   :  { %v753_v1 = vadd.f32 %v1031_v0, %v657_v59 }
 0x2f4   :  { %v747_v2 = vpop.f32.mrf.mxu1 }
 0x2f5   :  { %1054 = vtanh.f32 %v753_v1  ;;  %v748_v4 = vadd.f32 %v747_v2, %v653_v60 }
 0x2f7   :  { %1056 = vtanh.f32 %v748_v4 }
 0x2f8   :  { %1058 = vtanh.f32 %v743_v3 }
 0x2f9   :  { %1060 = vtanh.f32 %v738_v6 }
 0x302   :  { %v1055_v7 = vpop.eup %1054 }
 0x303   :  { %1033 = vmatpush3.msra.mxu0 %v1055_v7 }
 0x304   :  { %v1057_v8 = vpop.eup %1056  ;;  %1034 = vmatprep.subr.mxu0 %v1087_v58 }
 0x305   :  { %1035 = vmatpush3.msra.mxu0 %v1057_v8  ;;  %v1059_v9 = vpop.eup %1058 }
 0x306   :  { %1036 = vmatprep.subr.mxu0 %v1087_v58  ;;  %v1061_v11 = vpop.eup %1060 }
 0x307   :  { %1037 = vmatpush3.msra.mxu0 %v1059_v9 }
 0x308   :  { %1038 = vmatprep.subr.mxu0 %v1087_v58 }
 0x309   :  { %1039 = vmatpush3.msra.mxu0 %v1061_v11 }
 0x30a   :  { %1041 = vmatmul.mubr.msk.f32.vlgmr.msra.gmra.mxu0 %vm541_vm3, %v760_v10 }
 0x3ca   :  { %v830_v13 = vpop.f32.mrf.mxu0 }
 0x3cb   :  { %v836_v14 = vadd.f32 %v835_v12, %v830_v13 }
 0x3cc   :  { %v1042_v15 = vpop.f32.mrf.mxu0 }
 0x3cd   :  { %837 = vst [vmem:[#allocation3] sm:$0x1] %v836_v14 }
 0x3ce   :  { %1073 = shalt.err (!%p1070_p4)
}
 0x3cf   :  { %847 = dma.vmem_to_hbm [thread:$0]  %s845_s11, 16, %s1360_s9, [#allocation4]  }
 0x3d0   :  { %1082 = dma.done.wait [#allocation4], 16  }
 0x3d1   :  { %1083 = vsyncadd [#allocation4], 4294967280 }
 0x3d2   :  { %851 = vsyncpa [#allocation4], 1 }

</bundles_post_ra>
